<compile_context>
chip_gen: v6e
topology: v6e:2x2x1
jax: 0.10.0
libtpu: 0.0.40
codegen_flags: <defaults>
</compile_context>

<pallas_src>
import functools

import jax
import jax.numpy as jnp
from jax import lax
from jax.experimental import pallas as pl
from jax.experimental.pallas import tpu as pltpu


# ----------------------------------------------------------------------------
# Probe (once, on the real backend) whether pltpu.roll matches jnp.roll
# (result[i] = x[i - shift]); the conv tap shifts are built accordingly.
_ROLL_LIKE_NUMPY = None


def _roll_like_numpy():
    global _ROLL_LIKE_NUMPY
    if _ROLL_LIKE_NUMPY is None:
        def _k(x_ref, o_ref):
            o_ref[...] = pltpu.roll(x_ref[...], 1, axis=0)
        x = jnp.arange(8 * 128, dtype=jnp.float32).reshape(8, 128)
        y = pl.pallas_call(_k, out_shape=jax.ShapeDtypeStruct((8, 128), jnp.float32))(x)
        _ROLL_LIKE_NUMPY = bool(jnp.array_equal(y, jnp.roll(x, 1, axis=0)))
    return _ROLL_LIKE_NUMPY


# ----------------------------------------------------------------------------
# Kernel
def repncspelan4_kernel(x_ref, w_cv1, b_cv1, w1a, b1a, w1b, b1b,
                        w3r, b3r, wc3, bc3, w3o, b3o, w_cv4, b_cv4,
                        o_ref, *, H, W, roll_np):
    """x_ref: (M, c1) bf16 with M = imgs*H*W rows; o_ref: (M, c2) f32."""
    f32, bf16 = jnp.float32, jnp.bfloat16
    N = H * W
    M = x_ref.shape[0]

    def silu(v):
        return v * jax.nn.sigmoid(v)

    def shift_for(d):                       # shifted[n] = a[(n + d) mod M]
        return (-d) % M if roll_np else d % M

    # Per-row masks for SAME zero-padding of the 3x3 taps (also stop taps from
    # leaking across image boundaries when several images share the row axis).
    pos = lax.broadcasted_iota(jnp.int32, (M, 1), 0)
    pix = pos % N
    row = pix // W
    col = pix % W
    col_ok = {-1: col >= 1, 1: col < (W - 1)}
    row_ok = {-1: row >= 1, 1: row < (H - 1)}

    def mm(a16, w16):
        return jnp.dot(a16, w16, preferred_element_type=f32)

    def conv1x1(a16, w16, b):               # folded Conv+BN+SiLU, k=1
        return silu(mm(a16, w16) + b.reshape(1, -1))

    def conv3x3(a, w16, b):                 # folded Conv+BN+SiLU, k=3, SAME
        # im2col: 2 expensive +-1 rolls + 6 cheap +-W rolls, one cast, one
        # wide-K matmul on the (M, 9*cin) patch.
        base = {0: a}
        for dx in (-1, 1):
            r = pltpu.roll(a, shift_for(dx), axis=0)
            base[dx] = jnp.where(col_ok[dx], r, 0.0)
        pieces = []
        for dy in (-1, 0, 1):
            for dx in (-1, 0, 1):
                t = base[dx]
                if dy != 0:
                    t = pltpu.roll(t, shift_for(dy * W), axis=0)
                    t = jnp.where(row_ok[dy], t, 0.0)
                pieces.append(t)
        patch = jnp.concatenate(pieces, axis=-1).astype(bf16)   # (M, 9*cin)
        return silu(mm(patch, w16) + b.reshape(1, -1))

    def rep_branch(z16, wc1, bc1, wc2, bc2, wrep, brep, wbc2, bbc2,
                   wc3_, bc3_, wout, bout):
        a = conv1x1(z16, wc1, bc1)                    # RepCSP.cv1
        bb = conv1x1(z16, wc2, bc2)                   # RepCSP.cv2
        u = conv3x3(a, wrep, brep)                    # RepBottleneck.cv1 (fused RepConv)
        u = conv3x3(u, wbc2, bbc2)                    # RepBottleneck.cv2
        m = a + u                                     # bottleneck shortcut (c1 == c2)
        mb = jnp.concatenate([m.astype(bf16), bb.astype(bf16)], axis=-1)
        c = conv1x1(mb, wc3_, bc3_)                   # RepCSP.cv3 on cat([m, b])
        return conv3x3(c, wout, bout)                 # trailing Conv(c4, c4, 3)

    x16 = x_ref[...]                                  # (M, c1) bf16
    y = conv1x1(x16, w_cv1[...], b_cv1[...])          # cv1: (M, c3); channels = [y0 | y1]
    y16 = y.astype(bf16)

    # branch a consumes y1 through zero-padded weight rows (no lane slice of y)
    y2 = rep_branch(y16, w1a[0], b1a[0], w1a[1], b1a[1],
                    w3r[0], b3r[0], w3r[1], b3r[1],
                    wc3[0], bc3[0], w3o[0], b3o[0])
    y3 = rep_branch(y2.astype(bf16), w1b[0], b1b[0], w1b[1], b1b[1],
                    w3r[2], b3r[2], w3r[3], b3r[3],
                    wc3[1], bc3[1], w3o[1], b3o[1])

    # cv4 on cat([y0, y1, y2, y3]) = a single K = c3 + 2*c4 (= 128) matmul
    cat16 = jnp.concatenate([y16, y2.astype(bf16), y3.astype(bf16)], axis=-1)
    out = silu(mm(cat16, w_cv4[...]) + b_cv4[...])
    o_ref[...] = out.astype(o_ref.dtype)


# ----------------------------------------------------------------------------
# Wrapper
def repncspelan4_pallas(x_nchw, params):
    """x_nchw: (B, c1, H, W) f32 -> (B, c2, H, W) f32."""
    B, c1, H, W = x_nchw.shape
    N = H * W
    c3 = params["cv1_w"].shape[0]
    cc = c3 // 2
    c4 = params["a_out_w"].shape[0]
    cr = c4 // 2
    c2 = params["cv4_w"].shape[0]
    f32, bf16 = jnp.float32, jnp.bfloat16

    # NCHW -> (B*N, C): batch folded into the row axis, channels on lanes.
    x_rows = jnp.transpose(x_nchw, (0, 2, 3, 1)).reshape(B * N, c1).astype(bf16)

    def w1(m):                      # (cout, cin) -> (cin, cout) bf16
        return m.T.astype(bf16)

    def w1_pad(m, cin_full, off):   # rows [off, off+cin) of a (cin_full, cout) zero matrix
        z = jnp.zeros((cin_full, m.shape[0]), bf16)
        return z.at[off:off + m.shape[1]].set(w1(m))

    def w3(t):                      # (cout, cin, 3, 3) -> (9*cin, cout); tap = (dy+1)*3+(dx+1)
        cout, cin = t.shape[0], t.shape[1]
        return jnp.transpose(t, (2, 3, 1, 0)).reshape(9 * cin, cout).astype(bf16)

    def bias(b):
        return b.astype(f32)

    # Stacked weight slabs (fewer, larger DMAs; static leading index in-kernel).
    w_cv1 = w1(params["cv1_w"])                                         # (c1, c3)
    b_cv1 = bias(params["cv1_b"]).reshape(1, c3)
    w1a = jnp.stack([w1_pad(params["a_c1_w"], c3, cc),
                     w1_pad(params["a_c2_w"], c3, cc)])                 # (2, c3, cr)
    b1a = jnp.stack([bias(params["a_c1_b"]), bias(params["a_c2_b"])])   # (2, cr)
    w1b = jnp.stack([w1(params["b_c1_w"]), w1(params["b_c2_w"])])       # (2, c4, cr)
    b1b = jnp.stack([bias(params["b_c1_b"]), bias(params["b_c2_b"])])
    w3r = jnp.stack([w3(params["a_rep_w"]), w3(params["a_bc2_w"]),
                     w3(params["b_rep_w"]), w3(params["b_bc2_w"])])     # (4, 9*cr, cr)
    b3r = jnp.stack([bias(params["a_rep_b"]), bias(params["a_bc2_b"]),
                     bias(params["b_rep_b"]), bias(params["b_bc2_b"])])
    wc3 = jnp.stack([w1(params["a_c3_w"]), w1(params["b_c3_w"])])       # (2, 2*cr, c4)
    bc3 = jnp.stack([bias(params["a_c3_b"]), bias(params["b_c3_b"])])
    w3o = jnp.stack([w3(params["a_out_w"]), w3(params["b_out_w"])])     # (2, 9*c4, c4)
    b3o = jnp.stack([bias(params["a_out_b"]), bias(params["b_out_b"])])
    w_cv4 = w1(params["cv4_w"])                                         # (c3+2*c4, c2)
    b_cv4 = bias(params["cv4_b"]).reshape(1, c2)

    weights = [w_cv1, b_cv1, w1a, b1a, w1b, b1b, w3r, b3r,
               wc3, bc3, w3o, b3o, w_cv4, b_cv4]

    # Fold batch into M; group images per grid step so each step feeds the MXU
    # a few hundred rows (the kernel is step-overhead bound at small sizes).
    imgs = max(1, min(B, -(-512 // N)))
    while B % imgs:
        imgs -= 1
    rows = imgs * N
    steps = B // imgs

    def const_spec(a):
        zeros = (0,) * a.ndim
        return pl.BlockSpec(a.shape, lambda g, _z=zeros: _z)

    kernel = functools.partial(repncspelan4_kernel, H=H, W=W,
                               roll_np=_roll_like_numpy())

    # TODO(synk): for large detector feature maps add a spatial grid axis with a
    # halo for the chained 3x3 convs so the per-step footprint stays under
    # v7x's 64 MiB VMEM; at these sizes the whole image group fits comfortably.
    out = pl.pallas_call(
        kernel,
        out_shape=jax.ShapeDtypeStruct((B * N, c2), jnp.float32),
        grid=(steps,),
        in_specs=[pl.BlockSpec((rows, c1), lambda g: (g, 0))]
                 + [const_spec(a) for a in weights],
        out_specs=pl.BlockSpec((rows, c2), lambda g: (g, 0)),
        compiler_params=pltpu.CompilerParams(dimension_semantics=("parallel",)),
    )(x_rows, *weights)

    return out.reshape(B, H, W, c2).transpose(0, 3, 1, 2)


# ----------------------------------------------------------------------------
# Parameter construction (Conv+BN folded, RepConv fused) — plain-JAX glue.
def _fold_bn(w_oihw, gamma, beta, mean, var, eps=1e-5):
    s = gamma / jnp.sqrt(var + eps)
    return w_oihw * s[:, None, None, None], beta - mean * s


def _conv_bn(key, cin, cout, k):
    kw, kg, kb, km = jax.random.split(key, 4)
    w = 0.1 * jax.random.normal(kw, (cout, cin, k, k), jnp.float32)
    gamma = 1.0 + 0.05 * jax.random.normal(kg, (cout,), jnp.float32)
    beta = 0.02 * jax.random.normal(kb, (cout,), jnp.float32)
    mean = 0.02 * jax.random.normal(km, (cout,), jnp.float32)
    var = jnp.ones((cout,), jnp.float32)
    return _fold_bn(w, gamma, beta, mean, var)


def init_params(key, c1, c2, c3, c4):
    """RepNCSPELAN4(c1, c2, c3, c4, n=1) parameters (eval mode)."""
    cc, cr = c3 // 2, c4 // 2
    keys = iter(jax.random.split(key, 16))
    p = {}
    w, b = _conv_bn(next(keys), c1, c3, 1)
    p["cv1_w"], p["cv1_b"] = w[:, :, 0, 0], b
    for name, cin in (("a", cc), ("b", c4)):            # cv2 path, cv3 path
        w, b = _conv_bn(next(keys), cin, cr, 1)
        p[f"{name}_c1_w"], p[f"{name}_c1_b"] = w[:, :, 0, 0], b
        w, b = _conv_bn(next(keys), cin, cr, 1)
        p[f"{name}_c2_w"], p[f"{name}_c2_b"] = w[:, :, 0, 0], b
        # RepConv = (3x3 conv+BN) + (1x1 conv+BN); fuse exactly into one 3x3 conv.
        w3_, b3_ = _conv_bn(next(keys), cr, cr, 3)
        w1_, b1_ = _conv_bn(next(keys), cr, cr, 1)
        p[f"{name}_rep_w"] = w3_ + jnp.pad(w1_, ((0, 0), (0, 0), (1, 1), (1, 1)))
        p[f"{name}_rep_b"] = b3_ + b1_
        w, b = _conv_bn(next(keys), cr, cr, 3)
        p[f"{name}_bc2_w"], p[f"{name}_bc2_b"] = w, b
        w, b = _conv_bn(next(keys), 2 * cr, c4, 1)
        p[f"{name}_c3_w"], p[f"{name}_c3_b"] = w[:, :, 0, 0], b
        w, b = _conv_bn(next(keys), c4, c4, 3)
        p[f"{name}_out_w"], p[f"{name}_out_b"] = w, b
    w, b = _conv_bn(next(keys), c3 + 2 * c4, c2, 1)
    p["cv4_w"], p["cv4_b"] = w[:, :, 0, 0], b
    return p


# ----------------------------------------------------------------------------
# Pure-JAX reference (same bf16-operand / f32-accumulate precision policy).
def repncspelan4_reference(x_nchw, params):
    c3 = params["cv1_w"].shape[0]
    cc = c3 // 2
    bf16 = jnp.bfloat16

    def silu(v):
        return v * jax.nn.sigmoid(v)

    def conv1x1(x, w, b):                               # w: (cout, cin)
        y = jnp.einsum("bhwi,oi->bhwo", x.astype(bf16), w.astype(bf16),
                       preferred_element_type=jnp.float32)
        return silu(y + b.reshape(1, 1, 1, -1))

    def conv3x3(x, w, b):                               # w: (cout, cin, 3, 3)
        wh = jnp.transpose(w, (2, 3, 1, 0)).astype(bf16)    # HWIO
        y = lax.conv_general_dilated(
            x.astype(bf16), wh, (1, 1), "SAME",
            dimension_numbers=("NHWC", "HWIO", "NHWC"),
            preferred_element_type=jnp.float32)
        return silu(y + b.reshape(1, 1, 1, -1))

    def rep_branch(z, p):
        a = conv1x1(z, params[f"{p}_c1_w"], params[f"{p}_c1_b"])
        bb = conv1x1(z, params[f"{p}_c2_w"], params[f"{p}_c2_b"])
        u = conv3x3(a, params[f"{p}_rep_w"], params[f"{p}_rep_b"])
        u = conv3x3(u, params[f"{p}_bc2_w"], params[f"{p}_bc2_b"])
        m = a + u
        c = conv1x1(jnp.concatenate([m, bb], axis=-1),
                    params[f"{p}_c3_w"], params[f"{p}_c3_b"])
        return conv3x3(c, params[f"{p}_out_w"], params[f"{p}_out_b"])

    x = jnp.transpose(x_nchw, (0, 2, 3, 1))             # NHWC
    t = conv1x1(x, params["cv1_w"], params["cv1_b"])
    y0, y1 = t[..., :cc], t[..., cc:]
    y2 = rep_branch(y1, "a")
    y3 = rep_branch(y2, "b")
    out = conv1x1(jnp.concatenate([y0, y1, y2, y3], axis=-1),
                  params["cv4_w"], params["cv4_b"])
    return jnp.transpose(out, (0, 3, 1, 2))


if __name__ == "__main__":
    key = jax.random.PRNGKey(0)
    kx, kp = jax.random.split(key)

    # RepNCSPELAN4(c1=64, c2=128, c3=64, c4=32, n=1) on a (2, 64, 16, 16) input.
    B, c1, H, W = 2, 64, 16, 16
    c2, c3, c4 = 128, 64, 32

    x = jax.random.normal(kx, (B, c1, H, W), jnp.float32)
    params = init_params(kp, c1, c2, c3, c4)

    out = jax.block_until_ready(repncspelan4_pallas(x, params))
    assert out.shape == (B, c2, H, W)

    ref = repncspelan4_reference(x, params)
    err = float(jnp.max(jnp.abs(out - ref)))
    scale = float(jnp.max(jnp.abs(ref)))
    assert err <= 3e-2 * max(scale, 1.0), f"max abs err {err} (ref max {scale})"

    print("KERNEL_OK")
</pallas_src>

<mosaic_0001>
module attributes {stable_mosaic.version = 11 : i64} {
  func.func @_k(%arg0: memref<8x128xf32, #tpu.memory_space<vmem>>, %arg1: memref<8x128xf32, #tpu.memory_space<vmem>>) attributes {dimension_semantics = [], scalar_prefetch = 0 : i64, scratch_operands = 0 : i64, tpu.core_type = #tpu.core_type<tc>} {
    %c0 = arith.constant 0 : index
    %c0_0 = arith.constant 0 : index
    %0 = vector.load %arg0[%c0, %c0_0] : memref<8x128xf32, #tpu.memory_space<vmem>>, vector<8x128xf32>
    %c1_i32 = arith.constant 1 : i32
    %1 = tpu.dynamic_rotate %0 by %c1_i32 dim 0 : vector<8x128xf32>, i32 -> vector<8x128xf32>
    %c0_1 = arith.constant 0 : index
    %c0_2 = arith.constant 0 : index
    %2 = vector.load %arg1[%c0_1, %c0_2] : memref<8x128xf32, #tpu.memory_space<vmem>>, vector<8x128xf32>
    tpu.vector_store %arg1[%c0_1, %c0_2], %1 {strides = array<i32>} : memref<8x128xf32, #tpu.memory_space<vmem>>, vector<8x128xf32>,
    return
  }
}

</mosaic_0001>

<bundles_post_ra>
// kernel: tpu_custom_call.1
= control target key start
LH: loop header
LB: loop body
LE: loop exit
PB: predicated region body
PF: predicated region fallthrough
CT: control target
= control target key end

     0   :  { %6 = vsyncpa [#allocation3], 0  ;;  %s103_s0 = inlined_call_operand.hbm [shape: f32[8,128], index: 0, kind: input, shape index: {}]   ;;  %s104_s1 = inlined_call_operand.hbm [shape: f32[8,128], index: 1, kind: output, shape index: {}]  }
   0x1   :  { %7 = vsyncpa [#allocation4], 0  ;;  %s85_s6 = smov [#allocation2]  }
   0x2   :  { %s14_s7 = sshll.u32 %s85_s6, 4  ;;  %s15_s7 = int_to_ptr.vmem [resolvable:$true] %s14_s7 }
   0x3   :  { %s49_s8 = scalar_lea.vmem %s15_s7, 128  ;;  %p54_p1 = scmp.lt.s32.totalorder %s15_s7, %s15_s7 }
   0x4   :  { %p50_p0 = scmp.ne.s32.totalorder %s15_s7, %s49_s8  ;;  %p55_p2 = scmp.lt.s32.totalorder %s49_s8, %s49_s8 }
   0x6   :  { %p56_p3 = por %p55_p2, %p54_p1 }
   0x8   :  { %p57_p4 = pnand %p56_p3, %p50_p0 }
   0xa   :  { %60 = shalt.err (!%p57_p4)
}
   0xb   :  { %17 = dma.hbm_to_vmem [thread:$0]  %s103_s0, 128, %s15_s7, [#allocation3]  }
   0xc   :  { %81 = dma.done.wait [#allocation3], 128  }
   0xd   :  { %82 = vsyncadd [#allocation3], 4294967168  ;;  %s86_s11 = smov [#allocation5]   ;;  %v21_v0 = vld [vmem:[#allocation2] sm:$0xff] }
   0xe   :  { %s30_s12 = sshll.u32 %s86_s11, 4  ;;  %v22_v1 = vrot.slane %v21_v0, 7  ;;  %s31_s12 = int_to_ptr.vmem [resolvable:$true] %s30_s12 }
   0xf   :  { %s61_s13 = scalar_lea.vmem %s31_s12, 128  ;;  %p66_p6 = scmp.lt.s32.totalorder %s31_s12, %s31_s12 }
  0x10   :  { %23 = vst [vmem:[#allocation5] sm:$0xff] %v22_v1  ;;  %p62_p5 = scmp.ne.s32.totalorder %s31_s12, %s61_s13  ;;  %p67_p7 = scmp.lt.s32.totalorder %s61_s13, %s61_s13 }
  0x12   :  { %p68_p8 = por %p67_p7, %p66_p6 }
  0x14   :  { %p69_p9 = pnand %p68_p8, %p62_p5 }
  0x16   :  { %72 = shalt.err (!%p69_p9)
}
  0x17   :  { %33 = dma.vmem_to_hbm [thread:$0]  %s31_s12, 128, %s104_s1, [#allocation4]  }
  0x18   :  { %83 = dma.done.wait [#allocation4], 128  }
  0x19   :  { %84 = vsyncadd [#allocation4], 4294967168 }
  0x1a   :  { %37 = vsyncpa [#allocation3], 1 }
  0x1b   :  { %38 = vsyncpa [#allocation4], 1 }

</bundles_post_ra>
